<compile_context>
chip_gen: v7x
topology: tpu7x:2x2x1
jax: 0.10.0
libtpu: 0.0.40
codegen_flags: <defaults>
</compile_context>

<pallas_src>
import functools

import jax
import jax.numpy as jnp
from jax import lax
from jax.experimental import pallas as pl
from jax.experimental.pallas import tpu as pltpu

_LANE = 128
_SUBLANE = 8
# Keep each f32 tile <= ~2 MiB (double-buffered in + out ~= 8 MiB resident).
_MAX_TILE_BYTES = 2 * 1024 * 1024


def _exponential_kernel(w_ref, b_ref, x_ref, o_ref, *, order, fold_power_into_exp):
    # w_ref, b_ref: SMEM scalars (shape (1,)); x_ref/o_ref: VMEM tiles.
    w = w_ref[0]
    b = b_ref[0]
    x = x_ref[...]
    if fold_power_into_exp and isinstance(order, (int, float)):
        # exp(x)**order == exp(order*x): one EUP op instead of one exp + pow.
        # Gated off by default to match PyTorch's exp-then-pow exactly.
        p = jnp.exp(order * x)
    else:
        e = jnp.exp(x)
        if isinstance(order, int):
            # Repeated vmul on the VPU — free filler under the EUP/memory
            # bound. Never route through jnp.power (log+exp on the EUP).
            p = lax.integer_pow(e, order)
        else:
            p = e ** order
    o_ref[...] = w * p + b


def _round_up(n, m):
    return ((n + m - 1) // m) * m


def exponential_forward(x, weight, bias, order, *, fold_power_into_exp=False):
    """x: [rows, cols] float; weight, bias: shape (1,) float."""
    rows, cols = x.shape
    dtype = x.dtype

    # Lane-dense padding: cols -> multiple of 128, rows -> multiple of 8.
    cols_p = _round_up(cols, _LANE)
    bytes_per_row = cols_p * jnp.dtype(dtype).itemsize
    # Largest sublane-aligned row tile with tile bytes <= _MAX_TILE_BYTES.
    tr = max(_SUBLANE, (_MAX_TILE_BYTES // bytes_per_row) // _SUBLANE * _SUBLANE)
    rows_p = _round_up(rows, _SUBLANE)
    tr = min(tr, rows_p)
    rows_p = _round_up(rows_p, tr)  # avoid partial row tiles

    xp = x
    if (rows_p, cols_p) != (rows, cols):
        xp = jnp.pad(x, ((0, rows_p - rows), (0, cols_p - cols)))

    kernel = functools.partial(
        _exponential_kernel, order=order, fold_power_into_exp=fold_power_into_exp
    )

    out = pl.pallas_call(
        kernel,
        out_shape=jax.ShapeDtypeStruct((rows_p, cols_p), dtype),
        grid=(rows_p // tr,),
        in_specs=[
            pl.BlockSpec(memory_space=pltpu.SMEM),        # weight (1,)
            pl.BlockSpec(memory_space=pltpu.SMEM),        # bias   (1,)
            pl.BlockSpec((tr, cols_p), lambda i: (i, 0)),  # x tile
        ],
        out_specs=pl.BlockSpec((tr, cols_p), lambda i: (i, 0)),
        compiler_params=pltpu.CompilerParams(
            dimension_semantics=("parallel",),
        ),
    )(weight.astype(dtype), bias.astype(dtype), xp)

    if (rows_p, cols_p) != (rows, cols):
        out = out[:rows, :cols]
    return out


if __name__ == "__main__":
    order = 2

    # Deterministic parameter init.  Module __init__ uses zeros; we pick
    # nonzero deterministic values so the exp/power path is actually exercised.
    weight = jnp.full((1,), 0.5, dtype=jnp.float32)
    bias = jnp.full((1,), 0.25, dtype=jnp.float32)

    key = jax.random.PRNGKey(0)
    k0, k1 = jax.random.split(key)

    # Case 1: already lane/sublane aligned (single tile).
    x0 = jax.random.normal(k0, (8, 128), dtype=jnp.float32)
    out0 = jax.block_until_ready(exponential_forward(x0, weight, bias, order))
    ref0 = weight[:, None] * jnp.exp(x0) ** order + bias
    assert out0.shape == ref0.shape, (out0.shape, ref0.shape)
    assert jnp.allclose(out0, ref0, rtol=1e-6, atol=1e-6)

    # Case 2: unaligned shape exercising the pad/unpad path.
    x1 = jax.random.normal(k1, (37, 200), dtype=jnp.float32)
    out1 = jax.block_until_ready(exponential_forward(x1, weight, bias, order))
    ref1 = weight[:, None] * jnp.exp(x1) ** order + bias
    assert out1.shape == ref1.shape, (out1.shape, ref1.shape)
    assert jnp.allclose(out1, ref1, rtol=1e-6, atol=1e-6)

    print("KERNEL_OK")
</pallas_src>

<mosaic_0001>
module attributes {stable_mosaic.version = 11 : i64} {
  func.func @_exponential_kernel(%arg0: i32, %arg1: memref<1xf32, #tpu.memory_space<smem>>, %arg2: memref<1xf32, #tpu.memory_space<smem>>, %arg3: memref<8x128xf32, #tpu.memory_space<vmem>>, %arg4: memref<8x128xf32, #tpu.memory_space<vmem>>) attributes {dimension_semantics = [#tpu.dimension_semantics<parallel>], iteration_bounds = array<i64: 1>, scalar_prefetch = 0 : i64, scratch_operands = 0 : i64, tpu.core_type = #tpu.core_type<tc>, window_params = [{transform_indices = @transform_0, window_bounds = array<i64: 1>}, {transform_indices = @transform_1, window_bounds = array<i64: 1>}, {transform_indices = @transform_2, window_bounds = array<i64: 8, 128>}, {transform_indices = @transform_3, window_bounds = array<i64: 8, 128>}]} {
    %c0 = arith.constant 0 : index
    %0 = memref.load %arg1[%c0] : memref<1xf32, #tpu.memory_space<smem>>
    %c0_0 = arith.constant 0 : index
    %1 = memref.load %arg2[%c0_0] : memref<1xf32, #tpu.memory_space<smem>>
    %c0_1 = arith.constant 0 : index
    %c0_2 = arith.constant 0 : index
    %2 = vector.load %arg3[%c0_1, %c0_2] : memref<8x128xf32, #tpu.memory_space<vmem>>, vector<8x128xf32>
    %3 = math.exp %2 : vector<8x128xf32>
    %4 = arith.mulf %3, %3 : vector<8x128xf32>
    %5 = vector.broadcast %0 : f32 to vector<8x128xf32>
    %6 = arith.mulf %5, %4 : vector<8x128xf32>
    %7 = vector.broadcast %1 : f32 to vector<8x128xf32>
    %8 = arith.addf %6, %7 : vector<8x128xf32>
    %c0_3 = arith.constant 0 : index
    %c0_4 = arith.constant 0 : index
    %9 = vector.load %arg4[%c0_3, %c0_4] : memref<8x128xf32, #tpu.memory_space<vmem>>, vector<8x128xf32>
    tpu.vector_store %arg4[%c0_3, %c0_4], %8 {strides = array<i32>} : memref<8x128xf32, #tpu.memory_space<vmem>>, vector<8x128xf32>,
    return
  }
  func.func @transform_0(%arg0: i32) -> i32 {
    %c0_i32 = arith.constant 0 : i32
    %c0_i32_0 = arith.constant 0 : i32
    return %c0_i32 : i32
  }
  func.func @transform_1(%arg0: i32) -> i32 {
    %c0_i32 = arith.constant 0 : i32
    %c0_i32_0 = arith.constant 0 : i32
    return %c0_i32 : i32
  }
  func.func @transform_2(%arg0: i32) -> (i32, i32) {
    %c0_i32 = arith.constant 0 : i32
    %c0_i32_0 = arith.constant 0 : i32
    return %arg0, %c0_i32 : i32, i32
  }
  func.func @transform_3(%arg0: i32) -> (i32, i32) {
    %c0_i32 = arith.constant 0 : i32
    %c0_i32_0 = arith.constant 0 : i32
    return %arg0, %c0_i32 : i32, i32
  }
}

</mosaic_0001>

<bundles_post_ra>
// kernel: tpu_custom_call.1
= control target key start
LH: loop header
LB: loop body
LE: loop exit
PB: predicated region body
PF: predicated region fallthrough
CT: control target
= control target key end

     0   :  { %10 = vsyncpa [#allocation5], 0  ;;  %s159_s0 = inlined_call_operand.<no memory space> [shape: f32[1], index: 0, kind: input, shape index: {}]   ;;  %s160_s1 = inlined_call_operand.<no memory space> [shape: f32[1], index: 1, kind: input, shape index: {}]   ;;  %s161_s2 = inlined_call_operand.hbm [shape: f32[8,128], index: 2, kind: input, shape index: {}]   ;;  %s162_s3 = inlined_call_operand.hbm [shape: f32[8,128], index: 3, kind: output, shape index: {}]  }
   0x1   :  { %11 = vsyncpa [#allocation6], 0  ;;  %s107_s12 = smov [#allocation4]   ;;  %s59_s16 = scalar_lea.hbm %s161_s2, 128 }
   0x2   :  { %s22_s13 = sshll.u32 %s107_s12, 4  ;;  %p60_p0 = scmp.ne.s32.totalorder %s161_s2, %s59_s16  ;;  %s23_s13 = int_to_ptr.vmem [resolvable:$true] %s22_s13 }
   0x3   :  { %p63_p1 = scmp.lt.u32.totalorder %s59_s16, %s161_s2 }
   0x5   :  { %p65_p2 = pnand %p63_p1, %p60_p0 }
   0x7   :  { %68 = shalt.err (!%p65_p2)
}
   0x8   :  { %s69_s21 = scalar_lea.vmem %s23_s13, 128  ;;  %p74_p4 = scmp.lt.s32.totalorder %s23_s13, %s23_s13 }
   0x9   :  { %p70_p3 = scmp.ne.s32.totalorder %s23_s13, %s69_s21  ;;  %p75_p5 = scmp.lt.s32.totalorder %s69_s21, %s69_s21 }
   0xb   :  { %p76_p6 = por %p75_p5, %p74_p4 }
   0xd   :  { %p77_p7 = pnand %p76_p6, %p70_p3 }
   0xf   :  { %80 = shalt.err (!%p77_p7)
}
  0x10   :  { %25 = dma.hbm_to_vmem [thread:$0]  %s161_s2, 128, %s23_s13, [#allocation5]  }
  0x11   :  { %103 = dma.done.wait [#allocation5], 128  }
  0x12   :  { %104 = vsyncadd [#allocation5], 4294967168  ;;  %v31_v0 = vld [vmem:[#allocation4] sm:$0xff]  ;;  %v35_v3 = vstv %s159_s0  ;;  %v37_v5 = vstv %s160_s1  ;;  %s108_s28 = smov [#allocation7]  }
  0x13   :  { %v32_v1 = vmul.f32 1.442695, %v31_v0  ;;  %s46_s29 = sshll.u32 %s108_s28, 4  ;;  %s47_s29 = int_to_ptr.vmem [resolvable:$true] %s46_s29 }
  0x14   :  { %s81_s2 = scalar_lea.vmem %s47_s29, 128  ;;  %p86_p9 = scmp.lt.s32.totalorder %s47_s29, %s47_s29 }
  0x15   :  { %57 = vpow2.f32 %v32_v1  ;;  %p82_p8 = scmp.ne.s32.totalorder %s47_s29, %s81_s2  ;;  %p87_p10 = scmp.lt.s32.totalorder %s81_s2, %s81_s2 }
  0x17   :  { %p88_p11 = por %p87_p10, %p86_p9 }
  0x19   :  { %p89_p12 = pnand %p88_p11, %p82_p8 }
  0x1f   :  { %v58_v2 = vpop.eup %57 }
  0x20   :  { %v34_v4 = vmul.f32 %v58_v2, %v58_v2 }
  0x22   :  { %v36_v6 = vmul.f32 %v35_v3, %v34_v4 }
  0x24   :  { %v38_v7 = vadd.f32 %v37_v5, %v36_v6 }
  0x26   :  { %39 = vst [vmem:[#allocation7] sm:$0xff] %v38_v7 }
  0x27   :  { %92 = shalt.err (!%p89_p12)
}
  0x28   :  { %s93_s4 = scalar_lea.hbm %s162_s3, 128 }
  0x29   :  { %p94_p13 = scmp.ne.s32.totalorder %s162_s3, %s93_s4  ;;  %p97_p0 = scmp.lt.u32.totalorder %s93_s4, %s162_s3 }
  0x2b   :  { %p99_p1 = pnand %p97_p0, %p94_p13 }
  0x2d   :  { %102 = shalt.err (!%p99_p1)
}
  0x2e   :  { %49 = dma.vmem_to_hbm [thread:$0]  %s47_s29, 128, %s162_s3, [#allocation6]  }
  0x2f   :  { %105 = dma.done.wait [#allocation6], 128  }
  0x30   :  { %106 = vsyncadd [#allocation6], 4294967168 }
  0x31   :  { %53 = vsyncpa [#allocation5], 1 }
  0x32   :  { %54 = vsyncpa [#allocation6], 1 }

</bundles_post_ra>
